<compile_context>
chip_gen: v6e
topology: v6e:2x2x1
jax: 0.10.0
libtpu: 0.0.40
codegen_flags: <defaults>
</compile_context>

<pallas_src>
import functools

import jax
import jax.numpy as jnp
import numpy as np
from jax.experimental import pallas as pl
from jax.experimental.pallas import tpu as pltpu


# ----------------------------- model config ---------------------------------
STATE_DIM = 16
ACTION_DIM = 4
CLOCK_DIM = 6
NEURONS1 = (64, 48)          # small stand-ins for the default [400, 300]
NEURONS2 = 5
MAX_ACTION = 2.0
STEPS = 10                   # unused by forward(), kept for module fidelity

# original (unpadded) hyper-parameter layout — matches the PyTorch module
W1_SIZE = CLOCK_DIM * NEURONS2          # 30
W2_SIZE = NEURONS2 * ACTION_DIM         # 20
B1_SIZE = NEURONS2                      # 5
B2_SIZE = ACTION_DIM                    # 4
PARAM_DIM = W1_SIZE + W2_SIZE + B1_SIZE + B2_SIZE   # 59

# --------------------- padded, lane-aligned kernel layout --------------------
LANE = 128
SUB = 8
NP2 = 8                                 # neurons2   5 -> 8
AP = 8                                  # action_dim 4 -> 8
W1_PAD = CLOCK_DIM * NP2                # 48
W2_PAD = NP2 * AP                       # 64
W2_OFF = W1_PAD                         # 48
B1_OFF = W1_PAD + W2_PAD                # 112
B2_OFF = B1_OFF + NP2                   # 120
PARAM_PAD = B2_OFF + AP                 # 128 == exactly one vreg of lanes
OUT_PAD = LANE                          # lane-dense output width
IN_PACK = STATE_DIM + W1_PAD            # 64: state lanes [0,16), clock [16,64)


def _round_up(x, m):
    return (x + m - 1) // m * m


H1_PAD = _round_up(NEURONS1[0], LANE)   # 128
H2_PAD = _round_up(NEURONS1[1], LANE)   # 128


# ------------------------------- kernel -------------------------------------
def hyper_actor_kernel(x_ref,
                       w1_ref, b1_ref, w2_ref, b2_ref, w3_ref, b3_ref,
                       sel_ref, out_ref, *, max_action):
    f32 = jnp.float32
    bf16 = jnp.bfloat16

    x = x_ref[...]                                            # (TB, 64) f32
    state = x[:, :STATE_DIM].astype(bf16)                     # bf16 MXU operand
    clockx = x[:, STATE_DIM:]                                 # (TB, 48) f32

    # --- base MLP: bf16 MXU matmuls, f32 accumulate, f32 epilogue -------------
    h = jnp.dot(state, w1_ref[...], preferred_element_type=f32) + b1_ref[...]
    h = jnp.maximum(h, 0.0).astype(bf16)
    h = jnp.dot(h, w2_ref[...], preferred_element_type=f32) + b2_ref[...]
    h = jnp.maximum(h, 0.0).astype(bf16)
    params = jnp.dot(h, w3_ref[...], preferred_element_type=f32) + b3_ref[...]
    params = jnp.tanh(params)                                 # (TB, 128) f32

    # --- hyper layer 1: a = relu(clock @ w1h + b1h) ---------------------------
    # clockx is clock pre-expanded in the wrapper so clockx[:, c*8+n]==clock[:, c];
    # one full-width VPU multiply + six 8-lane-aligned static-slice adds.
    prod = clockx * params[:, 0:W1_PAD]                       # (TB, 48)
    a = params[:, B1_OFF:B1_OFF + NP2]                        # b1h (TB, 8)
    for c in range(CLOCK_DIM):
        a = a + prod[:, c * NP2:(c + 1) * NP2]
    a = jnp.maximum(a, 0.0)                                   # (TB, 8) pad lanes=0

    # --- hyper layer 2: y = a @ w2h + b2h (unrolled VPU fma, aligned slices) --
    y = params[:, B2_OFF:B2_OFF + AP]                         # b2h (TB, 8)
    for n in range(NEURONS2):          # only real neurons; padded lanes of a==0
        seg = params[:, W2_OFF + n * AP: W2_OFF + (n + 1) * AP]
        y = y + a[:, n:n + 1] * seg

    # --- lane-dense output ----------------------------------------------------
    # sel = eye(8,128): one tiny MXU matmul scatters the 8 action lanes into a
    # full 128-lane tile -> single unmasked full-width store (wrapper slices).
    t = max_action * jnp.tanh(y)                              # (TB, 8) f32
    out_ref[...] = jnp.dot(t, sel_ref[...], preferred_element_type=f32)


# ------------------------- weight re-layout (once) ---------------------------
def _pack_l3_columns(x):
    """Re-layout last axis from the module's packed 59-wide layout to the
    lane-aligned 128-wide kernel layout (neurons2 5->8, action_dim 4->8)."""
    out = jnp.zeros(x.shape[:-1] + (PARAM_PAD,), jnp.float32)
    for c in range(CLOCK_DIM):                               # w1h segments
        out = out.at[..., c * NP2:c * NP2 + NEURONS2].set(
            x[..., c * NEURONS2:(c + 1) * NEURONS2])
    for n in range(NEURONS2):                                # w2h segments
        out = out.at[..., W2_OFF + n * AP:W2_OFF + n * AP + ACTION_DIM].set(
            x[..., W1_SIZE + n * ACTION_DIM:W1_SIZE + (n + 1) * ACTION_DIM])
    out = out.at[..., B1_OFF:B1_OFF + NEURONS2].set(         # b1h
        x[..., W1_SIZE + W2_SIZE:W1_SIZE + W2_SIZE + NEURONS2])
    out = out.at[..., B2_OFF:B2_OFF + ACTION_DIM].set(       # b2h
        x[..., W1_SIZE + W2_SIZE + NEURONS2:])
    return out


def prepare_kernel_weights(weights):
    """Zero-pad base-MLP dims to 128 multiples (lane-dense matmul N), re-layout
    l3 columns to the aligned 128-lane hyper-parameter layout, and cast matmul
    weights to bf16 (biases stay f32; they're added post-accumulate).
    Pure layout plumbing — call ONCE per weight update, not per forward."""
    w1, b1, w2, b2, w3, b3 = weights
    h1, h2 = NEURONS1
    w1p = jnp.zeros((STATE_DIM, H1_PAD), jnp.float32).at[:, :h1].set(w1)
    b1p = jnp.zeros((1, H1_PAD), jnp.float32).at[:, :h1].set(b1)
    w2p = jnp.zeros((H1_PAD, H2_PAD), jnp.float32).at[:h1, :h2].set(w2)
    b2p = jnp.zeros((1, H2_PAD), jnp.float32).at[:, :h2].set(b2)
    w3p = jnp.zeros((H2_PAD, PARAM_DIM), jnp.float32).at[:h2, :].set(w3)
    w3p = _pack_l3_columns(w3p)                              # (H2_PAD, 128)
    b3p = _pack_l3_columns(b3)                               # (1, 128)
    sel = jnp.eye(AP, OUT_PAD, dtype=jnp.float32)            # (8, 128) scatter
    return (w1p.astype(jnp.bfloat16), b1p,
            w2p.astype(jnp.bfloat16), b2p,
            w3p.astype(jnp.bfloat16), b3p, sel)


# ------------------------------- wrapper -------------------------------------
@functools.partial(jax.jit, static_argnames=("block_b",))
def hyper_actor_forward(state, clock, prepared, *, block_b=2048):
    B = state.shape[0]
    w1p, b1p, w2p, b2p, w3p, b3p, sel = prepared

    # Balanced batch tiling: pick the number of grid steps first, then a tile
    # size that minimizes padding (e.g. B=260 -> 2 tiles of 136, not 512 rows).
    nb = pl.cdiv(B, block_b)
    if nb < 2 and B >= 2 * SUB:
        nb = 2                     # make sure v7x's two TensorCores both get work
    tb = _round_up(pl.cdiv(B, nb), SUB)
    b_pad = nb * tb

    # merged lane-packed input: state in lanes [0,16), expanded clock in [16,64)
    clockx = jnp.repeat(clock.astype(jnp.float32), NP2, axis=1)      # (B, 48)
    x = jnp.zeros((b_pad, IN_PACK), jnp.float32)
    x = x.at[:B, :STATE_DIM].set(state.astype(jnp.float32))
    x = x.at[:B, STATE_DIM:].set(clockx)

    kernel = functools.partial(hyper_actor_kernel, max_action=MAX_ACTION)

    flops = (2 * b_pad * (STATE_DIM * H1_PAD + H1_PAD * H2_PAD
                          + H2_PAD * PARAM_PAD + AP * OUT_PAD)
             + b_pad * (2 * W1_PAD + 2 * NEURONS2 * AP))
    bytes_accessed = (4 * b_pad * (IN_PACK + OUT_PAD)
                      + 2 * (STATE_DIM * H1_PAD + H1_PAD * H2_PAD
                             + H2_PAD * PARAM_PAD)
                      + 4 * (H1_PAD + H2_PAD + PARAM_PAD + AP * OUT_PAD))
    transcendentals = b_pad * (PARAM_PAD + AP)

    # Per-step VMEM footprint (double-buffered inputs/outputs + weights).
    # Only override the scoped-VMEM limit when it would exceed v5e's 16 MiB
    # default (v6e/v7x defaults are 32 MiB); leave headroom, cap below v7x's
    # 64 MiB physical VMEM.
    step_bytes = (tb * IN_PACK * 4 + tb * OUT_PAD * 4
                  + 2 * (STATE_DIM * H1_PAD + H1_PAD * H2_PAD + H2_PAD * PARAM_PAD)
                  + 4 * (H1_PAD + H2_PAD + PARAM_PAD + AP * OUT_PAD))
    vmem_needed = 2 * step_bytes
    vmem_limit = None
    if 2 * vmem_needed > 16 * 1024 * 1024:
        vmem_limit = min(2 * vmem_needed, 60 * 1024 * 1024)

    out_p = pl.pallas_call(
        kernel,
        out_shape=jax.ShapeDtypeStruct((b_pad, OUT_PAD), jnp.float32),
        grid=(nb,),
        in_specs=[
            pl.BlockSpec((tb, IN_PACK), lambda i: (i, 0)),     # state+clock tile
            pl.BlockSpec((STATE_DIM, H1_PAD), lambda i: (0, 0)),
            pl.BlockSpec((1, H1_PAD), lambda i: (0, 0)),
            pl.BlockSpec((H1_PAD, H2_PAD), lambda i: (0, 0)),
            pl.BlockSpec((1, H2_PAD), lambda i: (0, 0)),
            pl.BlockSpec((H2_PAD, PARAM_PAD), lambda i: (0, 0)),
            pl.BlockSpec((1, PARAM_PAD), lambda i: (0, 0)),
            pl.BlockSpec((AP, OUT_PAD), lambda i: (0, 0)),     # eye scatter
        ],
        out_specs=pl.BlockSpec((tb, OUT_PAD), lambda i: (i, 0)),
        compiler_params=pltpu.CompilerParams(
            dimension_semantics=("parallel",),
            vmem_limit_bytes=vmem_limit),
        cost_estimate=pl.CostEstimate(
            flops=flops, bytes_accessed=bytes_accessed,
            transcendentals=transcendentals),
    )(x, w1p, b1p, w2p, b2p, w3p, b3p, sel)

    return out_p[:B, :ACTION_DIM]


# ----------------------- deterministic parameter init ------------------------
def init_linear(key, fan_in, fan_out):
    # matches nn.Linear default: U(-1/sqrt(fan_in), 1/sqrt(fan_in))
    kw, kb = jax.random.split(key)
    bound = 1.0 / np.sqrt(fan_in)
    w = jax.random.uniform(kw, (fan_in, fan_out), jnp.float32, -bound, bound)
    b = jax.random.uniform(kb, (1, fan_out), jnp.float32, -bound, bound)
    return w, b


def reference_forward(state, clock, weights):
    """Pure-JAX f32 reference mirroring the PyTorch module exactly (unpadded)."""
    w1, b1, w2, b2, w3, b3 = weights
    h = jax.nn.relu(state @ w1 + b1)
    h = jax.nn.relu(h @ w2 + b2)
    params = jnp.tanh(h @ w3 + b3)
    B = state.shape[0]
    w1h = params[:, :W1_SIZE].reshape(B, CLOCK_DIM, NEURONS2)
    w2h = params[:, W1_SIZE:W1_SIZE + W2_SIZE].reshape(B, NEURONS2, ACTION_DIM)
    b1h = params[:, W1_SIZE + W2_SIZE:W1_SIZE + W2_SIZE + B1_SIZE].reshape(B, 1, -1)
    b2h = params[:, W1_SIZE + W2_SIZE + B1_SIZE:].reshape(B, 1, -1)
    c = clock.reshape(B, 1, CLOCK_DIM)
    a = jax.nn.relu(jnp.matmul(c, w1h) + b1h)
    a = jnp.matmul(a, w2h) + b2h
    a = a.reshape(B, -1)
    return MAX_ACTION * jnp.tanh(a)


if __name__ == "__main__":
    key = jax.random.PRNGKey(0)
    k_state, k_clock, k1, k2, k3 = jax.random.split(key, 5)

    B = 37   # deliberately not a multiple of 8 to exercise the batch padding
    state = jax.random.normal(k_state, (B, STATE_DIM), jnp.float32)
    clock = jax.random.normal(k_clock, (B, CLOCK_DIM), jnp.float32)

    w1, b1 = init_linear(k1, STATE_DIM, NEURONS1[0])
    w2, b2 = init_linear(k2, NEURONS1[0], NEURONS1[1])
    w3, b3 = init_linear(k3, NEURONS1[1], PARAM_DIM)
    weights = (w1, b1, w2, b2, w3, b3)

    # Repack/pad/cast weights ONCE (per weight update), outside the step path.
    prepared = jax.block_until_ready(prepare_kernel_weights(weights))

    out = jax.block_until_ready(hyper_actor_forward(state, clock, prepared))
    ref = jax.block_until_ready(reference_forward(state, clock, weights))
    # bf16 MXU operands (f32 accumulate/epilogue) -> ~1e-2-level agreement vs
    # the pure-f32 reference; 5e-2 tolerance gives comfortable margin.
    np.testing.assert_allclose(np.asarray(out), np.asarray(ref),
                               rtol=5e-2, atol=5e-2)
    print("KERNEL_OK")
</pallas_src>

<mosaic_0001>
module attributes {stable_mosaic.version = 11 : i64} {
  func.func @hyper_actor_kernel(%arg0: i32, %arg1: memref<24x64xf32, #tpu.memory_space<vmem>>, %arg2: memref<16x128xbf16, #tpu.memory_space<vmem>>, %arg3: memref<1x128xf32, #tpu.memory_space<vmem>>, %arg4: memref<128x128xbf16, #tpu.memory_space<vmem>>, %arg5: memref<1x128xf32, #tpu.memory_space<vmem>>, %arg6: memref<128x128xbf16, #tpu.memory_space<vmem>>, %arg7: memref<1x128xf32, #tpu.memory_space<vmem>>, %arg8: memref<8x128xf32, #tpu.memory_space<vmem>>, %arg9: memref<24x128xf32, #tpu.memory_space<vmem>>) attributes {dimension_semantics = [#tpu.dimension_semantics<parallel>], iteration_bounds = array<i64: 2>, scalar_prefetch = 0 : i64, scratch_operands = 0 : i64, tpu.core_type = #tpu.core_type<tc>, window_params = [{transform_indices = @transform_0, window_bounds = array<i64: 24, 64>}, {pipeline_mode = #tpu.pipeline_mode<synchronous>, transform_indices = @transform_1, window_bounds = array<i64: 16, 128>}, {pipeline_mode = #tpu.pipeline_mode<synchronous>, transform_indices = @transform_2, window_bounds = array<i64: 1, 128>}, {pipeline_mode = #tpu.pipeline_mode<synchronous>, transform_indices = @transform_3, window_bounds = array<i64: 128, 128>}, {pipeline_mode = #tpu.pipeline_mode<synchronous>, transform_indices = @transform_4, window_bounds = array<i64: 1, 128>}, {pipeline_mode = #tpu.pipeline_mode<synchronous>, transform_indices = @transform_5, window_bounds = array<i64: 128, 128>}, {pipeline_mode = #tpu.pipeline_mode<synchronous>, transform_indices = @transform_6, window_bounds = array<i64: 1, 128>}, {pipeline_mode = #tpu.pipeline_mode<synchronous>, transform_indices = @transform_7, window_bounds = array<i64: 8, 128>}, {transform_indices = @transform_8, window_bounds = array<i64: 24, 128>}]} {
    %c0 = arith.constant 0 : index
    %c0_0 = arith.constant 0 : index
    %0 = vector.load %arg1[%c0, %c0_0] : memref<24x64xf32, #tpu.memory_space<vmem>>, vector<24x64xf32>
    %1 = vector.extract_strided_slice %0 {offsets = [0, 0], sizes = [24, 16], strides = [1, 1]} : vector<24x64xf32> to vector<24x16xf32>
    %2 = arith.truncf %1 : vector<24x16xf32> to vector<24x16xbf16>
    %3 = vector.extract_strided_slice %0 {offsets = [0, 16], sizes = [24, 48], strides = [1, 1]} : vector<24x64xf32> to vector<24x48xf32>
    %c0_1 = arith.constant 0 : index
    %c0_2 = arith.constant 0 : index
    %4 = vector.load %arg2[%c0_1, %c0_2] : memref<16x128xbf16, #tpu.memory_space<vmem>>, vector<16x128xbf16>
    %cst = arith.constant dense<0.000000e+00> : vector<24x128xf32>
    %5 = tpu.matmul %2, %4, %cst {dimension_numbers = #tpu.dot_dimension_numbers<[1], [0], [0], [1], [0, 0, 1, 1], [], []>} : vector<24x16xbf16>, vector<16x128xbf16>, vector<24x128xf32> -> vector<24x128xf32>
    %c0_3 = arith.constant 0 : index
    %c0_4 = arith.constant 0 : index
    %6 = vector.load %arg3[%c0_3, %c0_4] : memref<1x128xf32, #tpu.memory_space<vmem>>, vector<1x128xf32>
    %7 = vector.broadcast %6 : vector<1x128xf32> to vector<24x128xf32>
    %8 = arith.addf %5, %7 : vector<24x128xf32>
    %cst_5 = arith.constant 0.000000e+00 : f32
    %9 = vector.broadcast %cst_5 : f32 to vector<24x128xf32>
    %10 = arith.maximumf %8, %9 : vector<24x128xf32>
    %11 = arith.truncf %10 : vector<24x128xf32> to vector<24x128xbf16>
    %c0_6 = arith.constant 0 : index
    %c0_7 = arith.constant 0 : index
    %12 = vector.load %arg4[%c0_6, %c0_7] : memref<128x128xbf16, #tpu.memory_space<vmem>>, vector<128x128xbf16>
    %cst_8 = arith.constant dense<0.000000e+00> : vector<24x128xf32>
    %13 = tpu.matmul %11, %12, %cst_8 {dimension_numbers = #tpu.dot_dimension_numbers<[1], [0], [0], [1], [0, 0, 1, 1], [], []>} : vector<24x128xbf16>, vector<128x128xbf16>, vector<24x128xf32> -> vector<24x128xf32>
    %c0_9 = arith.constant 0 : index
    %c0_10 = arith.constant 0 : index
    %14 = vector.load %arg5[%c0_9, %c0_10] : memref<1x128xf32, #tpu.memory_space<vmem>>, vector<1x128xf32>
    %15 = vector.broadcast %14 : vector<1x128xf32> to vector<24x128xf32>
    %16 = arith.addf %13, %15 : vector<24x128xf32>
    %cst_11 = arith.constant 0.000000e+00 : f32
    %17 = vector.broadcast %cst_11 : f32 to vector<24x128xf32>
    %18 = arith.maximumf %16, %17 : vector<24x128xf32>
    %19 = arith.truncf %18 : vector<24x128xf32> to vector<24x128xbf16>
    %c0_12 = arith.constant 0 : index
    %c0_13 = arith.constant 0 : index
    %20 = vector.load %arg6[%c0_12, %c0_13] : memref<128x128xbf16, #tpu.memory_space<vmem>>, vector<128x128xbf16>
    %cst_14 = arith.constant dense<0.000000e+00> : vector<24x128xf32>
    %21 = tpu.matmul %19, %20, %cst_14 {dimension_numbers = #tpu.dot_dimension_numbers<[1], [0], [0], [1], [0, 0, 1, 1], [], []>} : vector<24x128xbf16>, vector<128x128xbf16>, vector<24x128xf32> -> vector<24x128xf32>
    %c0_15 = arith.constant 0 : index
    %c0_16 = arith.constant 0 : index
    %22 = vector.load %arg7[%c0_15, %c0_16] : memref<1x128xf32, #tpu.memory_space<vmem>>, vector<1x128xf32>
    %23 = vector.broadcast %22 : vector<1x128xf32> to vector<24x128xf32>
    %24 = arith.addf %21, %23 : vector<24x128xf32>
    %25 = math.tanh %24 : vector<24x128xf32>
    %26 = vector.extract_strided_slice %25 {offsets = [0, 0], sizes = [24, 48], strides = [1, 1]} : vector<24x128xf32> to vector<24x48xf32>
    %27 = arith.mulf %3, %26 : vector<24x48xf32>
    %28 = vector.extract_strided_slice %25 {offsets = [0, 112], sizes = [24, 8], strides = [1, 1]} : vector<24x128xf32> to vector<24x8xf32>
    %29 = vector.extract_strided_slice %27 {offsets = [0, 0], sizes = [24, 8], strides = [1, 1]} : vector<24x48xf32> to vector<24x8xf32>
    %30 = arith.addf %28, %29 : vector<24x8xf32>
    %31 = vector.extract_strided_slice %27 {offsets = [0, 8], sizes = [24, 8], strides = [1, 1]} : vector<24x48xf32> to vector<24x8xf32>
    %32 = arith.addf %30, %31 : vector<24x8xf32>
    %33 = vector.extract_strided_slice %27 {offsets = [0, 16], sizes = [24, 8], strides = [1, 1]} : vector<24x48xf32> to vector<24x8xf32>
    %34 = arith.addf %32, %33 : vector<24x8xf32>
    %35 = vector.extract_strided_slice %27 {offsets = [0, 24], sizes = [24, 8], strides = [1, 1]} : vector<24x48xf32> to vector<24x8xf32>
    %36 = arith.addf %34, %35 : vector<24x8xf32>
    %37 = vector.extract_strided_slice %27 {offsets = [0, 32], sizes = [24, 8], strides = [1, 1]} : vector<24x48xf32> to vector<24x8xf32>
    %38 = arith.addf %36, %37 : vector<24x8xf32>
    %39 = vector.extract_strided_slice %27 {offsets = [0, 40], sizes = [24, 8], strides = [1, 1]} : vector<24x48xf32> to vector<24x8xf32>
    %40 = arith.addf %38, %39 : vector<24x8xf32>
    %cst_17 = arith.constant 0.000000e+00 : f32
    %41 = vector.broadcast %cst_17 : f32 to vector<24x8xf32>
    %42 = arith.maximumf %40, %41 : vector<24x8xf32>
    %43 = vector.extract_strided_slice %25 {offsets = [0, 120], sizes = [24, 8], strides = [1, 1]} : vector<24x128xf32> to vector<24x8xf32>
    %44 = vector.extract_strided_slice %25 {offsets = [0, 48], sizes = [24, 8], strides = [1, 1]} : vector<24x128xf32> to vector<24x8xf32>
    %45 = vector.extract_strided_slice %42 {offsets = [0, 0], sizes = [24, 1], strides = [1, 1]} : vector<24x8xf32> to vector<24x1xf32>
    %46 = vector.broadcast %45 : vector<24x1xf32> to vector<24x8xf32>
    %47 = arith.mulf %46, %44 : vector<24x8xf32>
    %48 = arith.addf %43, %47 : vector<24x8xf32>
    %49 = vector.extract_strided_slice %25 {offsets = [0, 56], sizes = [24, 8], strides = [1, 1]} : vector<24x128xf32> to vector<24x8xf32>
    %50 = vector.extract_strided_slice %42 {offsets = [0, 1], sizes = [24, 1], strides = [1, 1]} : vector<24x8xf32> to vector<24x1xf32>
    %51 = vector.broadcast %50 : vector<24x1xf32> to vector<24x8xf32>
    %52 = arith.mulf %51, %49 : vector<24x8xf32>
    %53 = arith.addf %48, %52 : vector<24x8xf32>
    %54 = vector.extract_strided_slice %25 {offsets = [0, 64], sizes = [24, 8], strides = [1, 1]} : vector<24x128xf32> to vector<24x8xf32>
    %55 = vector.extract_strided_slice %42 {offsets = [0, 2], sizes = [24, 1], strides = [1, 1]} : vector<24x8xf32> to vector<24x1xf32>
    %56 = vector.broadcast %55 : vector<24x1xf32> to vector<24x8xf32>
    %57 = arith.mulf %56, %54 : vector<24x8xf32>
    %58 = arith.addf %53, %57 : vector<24x8xf32>
    %59 = vector.extract_strided_slice %25 {offsets = [0, 72], sizes = [24, 8], strides = [1, 1]} : vector<24x128xf32> to vector<24x8xf32>
    %60 = vector.extract_strided_slice %42 {offsets = [0, 3], sizes = [24, 1], strides = [1, 1]} : vector<24x8xf32> to vector<24x1xf32>
    %61 = vector.broadcast %60 : vector<24x1xf32> to vector<24x8xf32>
    %62 = arith.mulf %61, %59 : vector<24x8xf32>
    %63 = arith.addf %58, %62 : vector<24x8xf32>
    %64 = vector.extract_strided_slice %25 {offsets = [0, 80], sizes = [24, 8], strides = [1, 1]} : vector<24x128xf32> to vector<24x8xf32>
    %65 = vector.extract_strided_slice %42 {offsets = [0, 4], sizes = [24, 1], strides = [1, 1]} : vector<24x8xf32> to vector<24x1xf32>
    %66 = vector.broadcast %65 : vector<24x1xf32> to vector<24x8xf32>
    %67 = arith.mulf %66, %64 : vector<24x8xf32>
    %68 = arith.addf %63, %67 : vector<24x8xf32>
    %69 = math.tanh %68 : vector<24x8xf32>
    %cst_18 = arith.constant 2.000000e+00 : f32
    %70 = vector.broadcast %cst_18 : f32 to vector<24x8xf32>
    %71 = arith.mulf %70, %69 : vector<24x8xf32>
    %c0_19 = arith.constant 0 : index
    %c0_20 = arith.constant 0 : index
    %72 = vector.load %arg8[%c0_19, %c0_20] : memref<8x128xf32, #tpu.memory_space<vmem>>, vector<8x128xf32>
    %cst_21 = arith.constant dense<0.000000e+00> : vector<24x128xf32>
    %73 = tpu.matmul %71, %72, %cst_21 {dimension_numbers = #tpu.dot_dimension_numbers<[1], [0], [0], [1], [0, 0, 1, 1], [], []>} : vector<24x8xf32>, vector<8x128xf32>, vector<24x128xf32> -> vector<24x128xf32>
    %c0_22 = arith.constant 0 : index
    %c0_23 = arith.constant 0 : index
    %74 = vector.load %arg9[%c0_22, %c0_23] : memref<24x128xf32, #tpu.memory_space<vmem>>, vector<24x128xf32>
    tpu.vector_store %arg9[%c0_22, %c0_23], %73 {strides = array<i32>} : memref<24x128xf32, #tpu.memory_space<vmem>>, vector<24x128xf32>,
    return
  }
  func.func @transform_0(%arg0: i32) -> (i32, i32) {
    %c0_i32 = arith.constant 0 : i32
    %c0_i32_0 = arith.constant 0 : i32
    return %arg0, %c0_i32 : i32, i32
  }
  func.func @transform_1(%arg0: i32) -> (i32, i32) {
    %c0_i32 = arith.constant 0 : i32
    %c0_i32_0 = arith.constant 0 : i32
    %c0_i32_1 = arith.constant 0 : i32
    return %c0_i32, %c0_i32_0 : i32, i32
  }
  func.func @transform_2(%arg0: i32) -> (i32, i32) {
    %c0_i32 = arith.constant 0 : i32
    %c0_i32_0 = arith.constant 0 : i32
    %c0_i32_1 = arith.constant 0 : i32
    return %c0_i32, %c0_i32_0 : i32, i32
  }
  func.func @transform_3(%arg0: i32) -> (i32, i32) {
    %c0_i32 = arith.constant 0 : i32
    %c0_i32_0 = arith.constant 0 : i32
    %c0_i32_1 = arith.constant 0 : i32
    return %c0_i32, %c0_i32_0 : i32, i32
  }
  func.func @transform_4(%arg0: i32) -> (i32, i32) {
    %c0_i32 = arith.constant 0 : i32
    %c0_i32_0 = arith.constant 0 : i32
    %c0_i32_1 = arith.constant 0 : i32
    return %c0_i32, %c0_i32_0 : i32, i32
  }
  func.func @transform_5(%arg0: i32) -> (i32, i32) {
    %c0_i32 = arith.constant 0 : i32
    %c0_i32_0 = arith.constant 0 : i32
    %c0_i32_1 = arith.constant 0 : i32
    return %c0_i32, %c0_i32_0 : i32, i32
  }
  func.func @transform_6(%arg0: i32) -> (i32, i32) {
    %c0_i32 = arith.constant 0 : i32
    %c0_i32_0 = arith.constant 0 : i32
    %c0_i32_1 = arith.constant 0 : i32
    return %c0_i32, %c0_i32_0 : i32, i32
  }
  func.func @transform_7(%arg0: i32) -> (i32, i32) {
    %c0_i32 = arith.constant 0 : i32
    %c0_i32_0 = arith.constant 0 : i32
    %c0_i32_1 = arith.constant 0 : i32
    return %c0_i32, %c0_i32_0 : i32, i32
  }
  func.func @transform_8(%arg0: i32) -> (i32, i32) {
    %c0_i32 = arith.constant 0 : i32
    %c0_i32_0 = arith.constant 0 : i32
    return %arg0, %c0_i32 : i32, i32
  }
}

</mosaic_0001>

<bundles_post_ra>
// kernel: hyper_actor_forward.1
= control target key start
LH: loop header
LB: loop body
LE: loop exit
PB: predicated region body
PF: predicated region fallthrough
CT: control target
= control target key end

     0   :  { %s1301_s27 = smov 0   ;;  %s1458_s0 = inlined_call_operand.vmem [shape: f32[48,64], index: 0, kind: input, shape index: {}]   ;;  %s1459_s1 = inlined_call_operand.vmem [shape: bf16[16,128], index: 1, kind: input, shape index: {}]   ;;  %s1460_s2 = inlined_call_operand.vmem [shape: f32[1,128], index: 2, kind: input, shape index: {}]   ;;  %s1461_s3 = inlined_call_operand.vmem [shape: bf16[128,128], index: 3, kind: input, shape index: {}]   ;;  %s1462_s4 = inlined_call_operand.vmem [shape: f32[1,128], index: 4, kind: input, shape index: {}]   ;;  %s1463_s5 = inlined_call_operand.vmem [shape: bf16[128,128], index: 5, kind: input, shape index: {}]   ;;  %s1464_s6 = inlined_call_operand.vmem [shape: f32[1,128], index: 6, kind: input, shape index: {}]   ;;  %s1465_s7 = inlined_call_operand.vmem [shape: f32[8,128], index: 7, kind: input, shape index: {}]   ;;  %s1466_s8 = inlined_call_operand.vmem [shape: f32[48,128], index: 8, kind: output, shape index: {}]  }
   0x1 LB: > { %s1044_s28 = sadd.s32 4294967295, %s1237_s27   ;;  %p1048_p0 = scmp.ge.s32.totalorder %s1237_s27, 1  ;;  %s1237_s27 = sphi %s1301_s27, %s18_s27  }
   0x2   : > { %p263_p1 = scmp.lt.s32.totalorder %s1237_s27, 3 }
   0x4   : > { %p264_p2 = pnand %p1048_p0, %p263_p1 }
   0x5   : > { %s297_s9 = smul.u32 (!%p264_p2), 3, %s1044_s28  ;;  %s1239_s13 = smov (!%p264_p2), 16  }
   0x6   : > { %267 = sbr.rel (%p264_p2) target bundleno = 1525 (0x5f5), region = 52  ;;  %s1240_s14 = smov (!%p264_p2), 88  }
   0x7   : > { %p298_p3 = scmp.lt.s32.totalorder (!%p264_p2), %s297_s9, 5  ;;  %s1241_s15 = smov (!%p264_p2), 96  }
   0x8   : > { %s1242_s17 = smov (!%p264_p2), 72   ;;  %s1243_s18 = smov (!%p264_p2), 80  }
   0x9   : > { %s1247_s20 = smov (!%p264_p2), 56   ;;  %s1251_s21 = smov (!%p264_p2), 48  }
   0xa   : > { %s1252_s22 = smov (!%p264_p2), 40   ;;  %s1255_s25 = smov (!%p264_p2), 8  }
   0xb   : > { %v1202_v0 = vld [vmem:[%s1459_s1] sm:$0xff]   ;;  %v1203_v1 = vld [vmem:[%s1461_s3 + $0x38] sm:$0xff]   ;;  %v1204_v2 = vld [vmem:[%s1461_s3 + $0x30] sm:$0xff]   ;;  %s1468_s9 = smov (!%p298_p3, %s297_s9), 5  ;;  %vm330_vm0 = vcmask 130048   ;;  %vm1254_vm1 = vmmov 0  }
   0xc   : > { %1105 = vmatprep.subr.bf16.mxu0 %v1202_v0  ;;  %1111 = vmatprep.subr.bf16.mxu1 %v1203_v1  ;;  %v1205_v3 = vld [vmem:[%s1461_s3 + $0x28] sm:$0xff]   ;;  %s1049_s16 = sshll.u32 %s1468_s9, 3  ;;  %v1206_v4 = vld [vmem:[%s1461_s3 + $0x20] sm:$0xff]   ;;  %v1207_v10 = vld [vmem:[%s1461_s3 + $0x18] sm:$0xff]   ;;  %vm898_vm2 = vcmask 64512  }
   0xd   : > { %1106 = vmatpush3.bf16.msra.mxu0 %v1202_v0  ;;  %1112 = vmatpush3.bf16.msra.mxu1 %v1203_v1  ;;  %s301_s19 = scalar_lea.vmem %s1458_s0, %s1049_s16  ;;  %v1208_v11 = vld [vmem:[%s1461_s3 + $0x10] sm:$0xff]   ;;  %v1209_v12 = vld [vmem:[%s1461_s3 + $0x8] sm:$0xff]   ;;  %v1210_v13 = vld [vmem:[%s1461_s3] sm:$0xff]   ;;  %v1244_v1 = vmov 113   ;;  %s307_s29 = scalar_lea.vmem %s1466_s8, %s1049_s16 }
   0xe   : > { %1113 = vmatprep.subr.bf16.mxu1 %v1204_v2  ;;  %v1332_v5 = vld [vmem:[%s301_s19] sm:$0xff]  ;;  %v1334_v6 = vld [vmem:[%s301_s19 + $0x8] sm:$0xff]  ;;  %v1336_v7 = vld [vmem:[%s301_s19 + $0x10] sm:$0xff]  ;;  %1197 = vset.pattern.permute.xlu0 %v1244_v1  ;;  %s1246_s19 = smov 64  }
   0xf   : > { %v313_v8 = vpack.c.bf16 %v1334_v6, %v1332_v5  ;;  %v314_v9 = vpack.c.bf16 %v1336_v7, %v1336_v7  ;;  %v1211_v14 = vld [vmem:[%s1463_s5 + $0x38] sm:$0xff]   ;;  %v1212_v15 = vld [vmem:[%s1463_s5 + $0x30] sm:$0xff]   ;;  %v1213_v16 = vld [vmem:[%s1463_s5 + $0x28] sm:$0xff]  }
  0x10   : > { %1131 = vmatprep.subr.bf16.mxu0 %v1211_v14  ;;  %v1214_v17 = vld [vmem:[%s1463_s5 + $0x20] sm:$0xff]   ;;  %v1215_v18 = vld [vmem:[%s1463_s5 + $0x18] sm:$0xff]   ;;  %v1216_v32 = vld [vmem:[%s1463_s5 + $0x10] sm:$0xff]  }
  0x11   : > { %1114 = vmatpush3.bf16.msra.mxu1 %v1204_v2  ;;  %1107 = vmatprep.mubr.msk.bf16.mxu0 %vm330_vm0, %v313_v8  ;;  %v1051_v20 = vld [vmem:[%s1460_s2] ss:$0 sm:$0xff]  ;;  %v1217_v33 = vld [vmem:[%s1463_s5 + $0x8] sm:$0xff]   ;;  %v1245_v2 = vmov 112  }
  0x12   : > { %1115 = vmatprep.subr.bf16.mxu1 %v1205_v3  ;;  %1108 = vmatmul.mubr.msk.bf16.vlgmr.msra.gmra.mxu0 %vm330_vm0, %v314_v9  ;;  %v1218_v34 = vld [vmem:[%s1463_s5] sm:$0xff]  }
  0x13   : > { %1132 = vmatpush3.bf16.msra.mxu0 %v1211_v14  ;;  %v1055_v36 = vld [vmem:[%s1462_s4] ss:$0 sm:$0xff]  ;;  %1189 = vset.pattern.permute.xlu1 %v1245_v2 }
  0x14   : > { %1133 = vmatprep.subr.bf16.mxu0 %v1212_v15  ;;  %v1064_v48 = vld [vmem:[%s1464_s6] ss:$0 sm:$0xff] }
  0x15   : > { %1116 = vmatpush3.bf16.msra.mxu1 %v1205_v3 }
  0x16   : > { %1117 = vmatprep.subr.bf16.mxu1 %v1206_v4 }
  0x17   : > { %1134 = vmatpush3.bf16.msra.mxu0 %v1212_v15 }
  0x18   : > { %1135 = vmatprep.subr.bf16.mxu0 %v1213_v16 }
  0x19   : > { %1118 = vmatpush3.bf16.msra.mxu1 %v1206_v4 }
  0x1a   : > { %1119 = vmatprep.subr.bf16.mxu1 %v1207_v10 }
  0x1b   : > { %1136 = vmatpush3.bf16.msra.mxu0 %v1213_v16 }
  0x1c   : > { %1137 = vmatprep.subr.bf16.mxu0 %v1214_v17 }
  0x1d   : > { %1120 = vmatpush3.bf16.msra.mxu1 %v1207_v10 }
  0x1e   : > { %1121 = vmatprep.subr.bf16.mxu1 %v1208_v11 }
  0x1f   : > { %1138 = vmatpush3.bf16.msra.mxu0 %v1214_v17 }
  0x20   : > { %1139 = vmatprep.subr.bf16.mxu0 %v1215_v18 }
  0x21   : > { %1122 = vmatpush3.bf16.msra.mxu1 %v1208_v11 }
  0x22   : > { %1123 = vmatprep.subr.bf16.mxu1 %v1209_v12 }
  0x23   : > { %1140 = vmatpush3.bf16.msra.mxu0 %v1215_v18 }
  0x24   : > { %1141 = vmatprep.subr.bf16.mxu0 %v1216_v32 }
  0x25   : > { %1124 = vmatpush3.bf16.msra.mxu1 %v1209_v12 }
  0x26   : > { %1125 = vmatprep.subr.bf16.mxu1 %v1210_v13 }
  0x27   : > { %1142 = vmatpush3.bf16.msra.mxu0 %v1216_v32 }
  0x28   : > { %1143 = vmatprep.subr.bf16.mxu0 %v1217_v33 }
  0x29   : > { %1126 = vmatpush3.bf16.msra.mxu1 %v1210_v13 }
  0x2b   : > { %1144 = vmatpush3.bf16.msra.mxu0 %v1217_v33 }
  0x2c   : > { %1145 = vmatprep.subr.bf16.mxu0 %v1218_v34 }
  0x2f   : > { %1146 = vmatpush3.bf16.msra.mxu0 %v1218_v34 }
  0xd2   : > { %v1109_v19 = vpop.f32.mrf.mxu0 }
  0xd3   : > { %v380_v22 = vadd.f32 %v1109_v19, %v1051_v20 }
  0xd4   : > { %v371_v21 = vpop.f32.mrf.mxu0 }
  0xd5   : > { %v372_v24 = vadd.f32 %v1051_v20, %v371_v21  ;;  %v387_v27 = vmax.f32 %v380_v22, 0.0 }
  0xd6   : > { %v1110_v23 = vpop.f32.mrf.mxu0 }
  0xd7   : > { %v385_v28 = vmax.f32 %v372_v24, 0.0  ;;  %v389_v31 = vpack.c.bf16 %v387_v27, %v387_v27 }
  0xd8   : > { %v374_v25 = vpop.f32.mrf.mxu0 }
  0xd9   : > { %v375_v26 = vadd.f32 %v1051_v20, %v374_v25 }
  0xdb   : > { %v386_v29 = vmax.f32 %v375_v26, 0.0 }
  0xdd   : > { %v388_v30 = vpack.c.bf16 %v386_v29, %v385_v28 }
  0xdf   : > { %1127 = vmatprep.mubr.bf16.mxu1 %v388_v30 }
  0xe0   : > { %1128 = vmatmul.mubr.bf16.vlgmr.msra.gmra.mxu1 %v389_v31 }
 0x1a0   : > { %v1129_v35 = vpop.f32.mrf.mxu1 }
 0x1a1   : > { %v504_v38 = vadd.f32 %v1129_v35, %v1055_v36 }
 0x1a2   : > { %v495_v37 = vpop.f32.mrf.mxu1 }
 0x1a3   : > { %v496_v40 = vadd.f32 %v1055_v36, %v495_v37  ;;  %v511_v43 = vmax.f32 %v504_v38, 0.0 }
 0x1a4   : > { %v1130_v39 = vpop.f32.mrf.mxu1 }
 0x1a5   : > { %v509_v44 = vmax.f32 %v496_v40, 0.0  ;;  %v513_v47 = vpack.c.bf16 %v511_v43, %v511_v43  ;;  %v1249_v39 = vmov 115   ;;  %v1250_v43 = vmov 116  }
 0x1a6   : > { %v498_v41 = vpop.f32.mrf.mxu1 }
 0x1a7   : > { %v499_v42 = vadd.f32 %v1055_v36, %v498_v41  ;;  %v1248_v36 = vmov 114  }
 0x1a9   : > { %v510_v45 = vmax.f32 %v499_v42, 0.0 }
 0x1ab   : > { %v512_v46 = vpack.c.bf16 %v510_v45, %v509_v44 }
 0x1ad   : > { %1147 = vmatprep.mubr.bf16.mxu0 %v512_v46 }
 0x1ae   : > { %1148 = vmatmul.mubr.bf16.vlgmr.msra.gmra.mxu0 %v513_v47 }
 0x26e   : > { %v1149_v49 = vpop.f32.mrf.mxu0 }
 0x26f   : > { %v628_v50 = vadd.f32 %v1149_v49, %v1064_v48 }
 0x270   : > { %v619_v51 = vpop.f32.mrf.mxu0 }
 0x271   : > { %1219 = vtanh.f32 %v628_v50  ;;  %v620_v55 = vadd.f32 %v1064_v48, %v619_v51 }
 0x272   : > { %v1150_v52 = vpop.f32.mrf.mxu0 }
 0x274   : > { %v622_v53 = vpop.f32.mrf.mxu0 }
 0x275   : > { %v623_v54 = vadd.f32 %v1064_v48, %v622_v53 }
 0x277   : > { %1221 = vtanh.f32 %v623_v54 }
 0x278   : > { %1223 = vtanh.f32 %v620_v55 }
 0x27e   : > { %v1387_v56 = vpop.eup %1219 }
 0x27f   : > { %643 = vrot.lane.b32.xlu1 %v1387_v56, %s1239_s13 }
 0x284   : > { %v1390_v57 = vpop.eup %1221 }
 0x285   : > { %641 = vrot.lane.b32.xlu0 %v1390_v57, %s1239_s13  ;;  %v1393_v58 = vpop.eup %1223 }
 0x289   : > { %639 = vrot.lane.b32.xlu0 %v1393_v58, %s1239_s13 }
 0x2f1   : > { %v644_v59 = vpop.permute.xlu1 %643 }
 0x2f2   : > { %v650_v60 = vmul.f32 %v644_v59, %v1336_v7 }
 0x2f4   : > { %670 = vrot.lane.b32.xlu1 %v650_v60, %s1240_s14  ;;  %658 = vrot.lane.b32.xlu0 %v650_v60, %s1241_s15 }
 0x2f7   : > { %v642_v61 = vpop.permute.xlu0 %641 }
 0x2f8   : > { %694 = vrot.lane.b32.xlu1 %v650_v60, %s1242_s17  ;;  %682 = vrot.lane.b32.xlu0 %v650_v60, %s1243_s18  ;;  %v649_v0 = vmul.f32 %v642_v61, %v1334_v6 }
 0x2fb   : > { %v640_v62 = vpop.permute.xlu0 %639 }
 0x2fc   : > { %v648_v63 = vmul.f32 %v640_v62, %v1332_v5 }
 0x2fe   : > { %666 = vrot.lane.b32.xlu0 %v648_v63, %s1240_s14  ;;  %654 = vrot.lane.b32.xlu1 %v648_v63, %s1241_s15 }
 0x302   : > { %690 = vrot.lane.b32.xlu0 %v648_v63, %s1242_s17  ;;  %678 = vrot.lane.b32.xlu1 %v648_v63, %s1243_s18 }
 0x306   : > { %668 = vrot.lane.b32.xlu0 %v649_v0, %s1240_s14  ;;  %656 = vrot.lane.b32.xlu1 %v649_v0, %s1241_s15 }
 0x30a   : > { %692 = vrot.lane.b32.xlu0 %v649_v0, %s1242_s17  ;;  %680 = vrot.lane.b32.xlu1 %v649_v0, %s1243_s18 }
 0x30e   : > { %706 = vrot.lane.b32.xlu0 %v650_v60, %s1246_s19  ;;  %704 = vrot.lane.b32.xlu1 %v649_v0, %s1246_s19 }
 0x312   : > { %716 = vrot.lane.b32.xlu0 %v649_v0, %s1247_s20  ;;  %702 = vrot.lane.b32.xlu1 %v648_v63, %s1246_s19 }
 0x316   : > { %718 = vrot.lane.b32.xlu0 %v650_v60, %s1247_s20  ;;  %714 = vrot.lane.b32.xlu1 %v648_v63, %s1247_s20 }
 0x366   : > { %v671_v3 = vpop.permute.xlu1 %670  ;;  %v659_v4 = vpop.permute.xlu0 %658 }
 0x367   : > { %v665_v13 = vadd.f32 %v1387_v56, %v659_v4 }
 0x369   : > { %v677_v18 = vadd.f32 %v671_v3, %v665_v13 }
 0x36a   : > { %v695_v5 = vpop.permute.xlu1 %694  ;;  %v683_v6 = vpop.permute.xlu0 %682 }
 0x36b   : > { %v689_v23 = vadd.f32 %v683_v6, %v677_v18 }
 0x36d   : > { %v701_v26 = vadd.f32 %v695_v5, %v689_v23 }
 0x370   : > { %v655_v7 = vpop.permute.xlu1 %654  ;;  %v667_v8 = vpop.permute.xlu0 %666 }
 0x371   : > { %v663_v28 = vadd.f32 %v1393_v58, %v655_v7 }
 0x373   : > { %v675_v33 = vadd.f32 %v667_v8, %v663_v28 }
 0x374   : > { %v679_v9 = vpop.permute.xlu1 %678  ;;  %v691_v10 = vpop.permute.xlu0 %690 }
 0x375   : > { %v687_v37 = vadd.f32 %v679_v9, %v675_v33 }
 0x377   : > { %v699_v38 = vadd.f32 %v691_v10, %v687_v37 }
 0x378   : > { %v657_v11 = vpop.permute.xlu1 %656  ;;  %v669_v12 = vpop.permute.xlu0 %668 }
 0x379   : > { %v664_v14 = vadd.f32 %v1390_v57, %v657_v11 }
 0x37b   : > { %v676_v15 = vadd.f32 %v669_v12, %v664_v14  ;;  %v888_v14 = vld [vmem:[%s1465_s7] sm:$0xff] }
 0x37c   : > { %v681_v16 = vpop.permute.xlu1 %680  ;;  %v693_v17 = vpop.permute.xlu0 %692 }
 0x37d   : > { %v688_v19 = vadd.f32 %v681_v16, %v676_v15  ;;  %v1253_v15 = vmov 0.0  }
 0x37e   : > { %1162 = vmatprep.subr.mxu1 %v1253_v15  ;;  %1151 = vmatprep.subr.mxu0 %v1253_v15 }
 0x37f   : > { %v700_v20 = vadd.f32 %v693_v17, %v688_v19  ;;  %1163 = vmatpush3.msra.mxu1 %v888_v14  ;;  %1152 = vmatpush3.msra.mxu0 %v888_v14 }
 0x380   : > { %v705_v21 = vpop.permute.xlu1 %704  ;;  %v707_v22 = vpop.permute.xlu0 %706  ;;  %1153 = vmatprep.mubr.msk.f32.mxu0 %vm1254_vm1, %v1253_v15  ;;  %1156 = vmatprep.mubr.msk.f32.mxu1 %vm1254_vm1, %v1253_v15 }
 0x381   : > { %v712_v24 = vadd.f32 %v705_v21, %v700_v20  ;;  %v713_v29 = vadd.f32 %v707_v22, %v701_v26 }
 0x384   : > { %v717_v25 = vpop.permute.xlu0 %716  ;;  %v703_v35 = vpop.permute.xlu1 %702 }
 0x385   : > { %v724_v27 = vadd.f32 %v717_v25, %v712_v24  ;;  %v711_v41 = vadd.f32 %v703_v35, %v699_v38 }
 0x387   : > { %v727_v30 = vmax.f32 %v724_v27, 0.0 }
 0x388   : > { %v719_v31 = vpop.permute.xlu0 %718  ;;  %v715_v40 = vpop.permute.xlu1 %714 }
 0x389   : > { %v725_v32 = vadd.f32 %v719_v31, %v713_v29  ;;  %767 = vperm.xlu0 %1197, %v727_v30   ;;  %v723_v42 = vadd.f32 %v715_v40, %v711_v41 }
 0x38b   : > { %v728_v34 = vmax.f32 %v725_v32, 0.0  ;;  %v726_v44 = vmax.f32 %v723_v42, 0.0 }
 0x38d   : > { %1198 = vset.pattern.permute.xlu0 %v1248_v36  ;;  %741 = vperm.xlu1 %1189, %v728_v34  }
 0x38e   : > { %797 = vperm.xlu0 %1198, %v727_v30  }
 0x391   : > { %1190 = vset.pattern.permute.xlu1 %v1244_v1 }
 0x392   : > { %1199 = vset.pattern.permute.xlu0 %v1249_v39  ;;  %771 = vperm.xlu1 %1190, %v728_v34  }
 0x393   : > { %827 = vperm.xlu0 %1199, %v727_v30  }
 0x396   : > { %1191 = vset.pattern.permute.xlu1 %v1248_v36 }
 0x397   : > { %1200 = vset.pattern.permute.xlu0 %v1250_v43  ;;  %801 = vperm.xlu1 %1191, %v728_v34  }
 0x398   : > { %857 = vperm.xlu0 %1200, %v727_v30  }
 0x39b   : > { %1192 = vset.pattern.permute.xlu1 %v1245_v2 }
 0x39c   : > { %853 = vperm.xlu0 %1200, %v726_v44   ;;  %731 = vperm.xlu1 %1192, %v726_v44  }
 0x3a0   : > { %1193 = vset.pattern.permute.xlu1 %v1244_v1 }
 0x3a1   : > { %763 = vperm.xlu1 %1193, %v726_v44  }
 0x3a5   : > { %1194 = vset.pattern.permute.xlu1 %v1248_v36 }
 0x3a6   : > { %793 = vperm.xlu1 %1194, %v726_v44  }
 0x3aa   : > { %1195 = vset.pattern.permute.xlu1 %v1245_v2 }
 0x3ab   : > { %736 = vperm.xlu1 %1195, %v727_v30  }
 0x3af   : > { %1196 = vset.pattern.permute.xlu1 %v1249_v39 }
 0x3b0   : > { %823 = vperm.xlu1 %1196, %v726_v44  }
 0x3b4   : > { %831 = vperm.xlu1 %1196, %v728_v34  }
 0x3b8   : > { %1201 = vset.pattern.permute.xlu1 %v1250_v43 }
 0x3b9   : > { %861 = vperm.xlu1 %1201, %v728_v34  }
 0x404   : > { %v768_v51 = vpop.permute.xlu0 %767 }
 0x405   : > { %v775_v60 = vmul.f32 %v1390_v57, %v768_v51 }
 0x408   : > { %v742_v45 = vpop.permute.xlu1 %741 }
 0x409   : > { %v746_v46 = vmul.f32 %v1387_v56, %v742_v45  ;;  %v798_v54 = vpop.permute.xlu0 %797 }
 0x40a   : > { %v805_v4 = vmul.f32 %v1390_v57, %v798_v54 }
 0x40b   : > { %754 = vrot.lane.b32.xlu1 %v746_v46, %s1242_s17 }
 0x40d   : > { %v772_v47 = vpop.permute.xlu1 %771 }
 0x40e   : > { %v776_v48 = vmul.f32 %v1387_v56, %v772_v47  ;;  %v828_v61 = vpop.permute.xlu0 %827 }
 0x40f   : > { %v835_v0 = vmul.f32 %v1390_v57, %v828_v61 }
 0x410   : > { %784 = vrot.lane.b32.xlu0 %v776_v48, %s1246_s19 }
 0x412   : > { %v802_v49 = vpop.permute.xlu1 %801 }
 0x413   : > { %v806_v50 = vmul.f32 %v1387_v56, %v802_v49  ;;  %v858_v2 = vpop.permute.xlu0 %857 }
 0x414   : > { %v865_v11 = vmul.f32 %v1390_v57, %v858_v2 }
 0x415   : > { %814 = vrot.lane.b32.xlu1 %v806_v50, %s1247_s20 }
 0x417   : > { %v732_v52 = vpop.permute.xlu1 %731  ;;  %v854_v7 = vpop.permute.xlu0 %853 }
 0x418   : > { %v744_v53 = vmul.f32 %v1393_v58, %v732_v52  ;;  %v864_v9 = vmul.f32 %v1393_v58, %v854_v7 }
 0x41a   : > { %750 = vrot.lane.b32.xlu0 %v744_v53, %s1242_s17 }
 0x41c   : > { %v764_v55 = vpop.permute.xlu1 %763 }
 0x41d   : > { %v774_v59 = vmul.f32 %v1393_v58, %v764_v55 }
 0x41f   : > { %780 = vrot.lane.b32.xlu1 %v774_v59, %s1246_s19 }
 0x421   : > { %v794_v62 = vpop.permute.xlu1 %793 }
 0x422   : > { %v804_v63 = vmul.f32 %v1393_v58, %v794_v62 }
 0x423   : > { %782 = vrot.lane.b32.xlu1 %v775_v60, %s1246_s19 }
 0x424   : > { %810 = vrot.lane.b32.xlu0 %v804_v63, %s1247_s20 }
 0x426   : > { %v737_v1 = vpop.permute.xlu1 %736 }
 0x427   : > { %v745_v3 = vmul.f32 %v1390_v57, %v737_v1  ;;  %842 = vrot.lane.b32.xlu1 %v835_v0, %s1251_s21 }
 0x429   : > { %752 = vrot.lane.b32.xlu0 %v745_v3, %s1242_s17 }
 0x42b   : > { %v824_v5 = vpop.permute.xlu1 %823 }
 0x42c   : > { %v834_v6 = vmul.f32 %v1393_v58, %v824_v5 }
 0x42d   : > { %812 = vrot.lane.b32.xlu0 %v805_v4, %s1247_s20 }
 0x42e   : > { %840 = vrot.lane.b32.xlu1 %v834_v6, %s1251_s21 }
 0x42f   : > { %v832_v8 = vpop.permute.xlu1 %831 }
 0x430   : > { %v836_v10 = vmul.f32 %v1387_v56, %v832_v8 }
 0x432   : > { %844 = vrot.lane.b32.xlu0 %v836_v10, %s1251_s21  ;;  %870 = vrot.lane.b32.xlu1 %v864_v9, %s1252_s22 }
 0x434   : > { %v862_v12 = vpop.permute.xlu1 %861 }
 0x435   : > { %v866_v13 = vmul.f32 %v1387_v56, %v862_v12 }
 0x436   : > { %872 = vrot.lane.b32.xlu0 %v865_v11, %s1252_s22 }
 0x43a   : > { %874 = vrot.lane.b32.xlu0 %v866_v13, %s1252_s22 }
 0x47d   : > { %v755_v16 = vpop.permute.xlu1 %754 }
 0x47e   : > { %v761_v36 = vadd.f32 %v1387_v56, %v755_v16 }
 0x482   : > { %v785_v18 = vpop.permute.xlu0 %784 }
 0x483   : > { %v791_v38 = vadd.f32 %v785_v18, %v761_v36 }
 0x487   : > { %v815_v17 = vpop.permute.xlu1 %814 }
 0x488   : > { %v821_v41 = vadd.f32 %v815_v17, %v791_v38 }
 0x48c   : > { %v751_v20 = vpop.permute.xlu0 %750 }
 0x48d   : > { %v759_v26 = vadd.f32 %v1393_v58, %v751_v20 }
 0x491   : > { %v781_v19 = vpop.permute.xlu1 %780 }
 0x492   : > { %v789_v27 = vadd.f32 %v781_v19, %v759_v26 }
 0x495   : > { %v783_v21 = vpop.permute.xlu1 %782 }
 0x496   : > { %v811_v22 = vpop.permute.xlu0 %810 }
 0x497   : > { %v819_v31 = vadd.f32 %v811_v22, %v789_v27 }
 0x499   : > { %v843_v24 = vpop.permute.xlu1 %842 }
 0x49b   : > { %v753_v23 = vpop.permute.xlu0 %752 }
 0x49c   : > { %v760_v25 = vadd.f32 %v1390_v57, %v753_v23 }
 0x49e   : > { %v790_v28 = vadd.f32 %v783_v21, %v760_v25 }
 0x49f   : > { %v813_v29 = vpop.permute.xlu0 %812 }
 0x4a0   : > { %v841_v30 = vpop.permute.xlu1 %840  ;;  %v820_v32 = vadd.f32 %v813_v29, %v790_v28 }
 0x4a1   : > { %v849_v33 = vadd.f32 %v841_v30, %v819_v31 }
 0x4a2   : > { %v850_v39 = vadd.f32 %v843_v24, %v820_v32 }
 0x4a4   : > { %v871_v34 = vpop.permute.xlu1 %870  ;;  %v845_v35 = vpop.permute.xlu0 %844 }
 0x4a5   : > { %v879_v37 = vadd.f32 %v871_v34, %v849_v33  ;;  %v851_v42 = vadd.f32 %v845_v35, %v821_v41 }
 0x4a7   : > { %1225 = vtanh.f32 %v879_v37 }
 0x4a8   : > { %v873_v40 = vpop.permute.xlu0 %872 }
 0x4a9   : > { %v880_v57 = vadd.f32 %v873_v40, %v850_v39 }
 0x4ab   : > { %1227 = vtanh.f32 %v880_v57 }
 0x4ac   : > { %v875_v58 = vpop.permute.xlu0 %874 }
 0x4ad   : > { %v881_v43 = vadd.f32 %v875_v58, %v851_v42 }
 0x4af   : > { %1229 = vtanh.f32 %v881_v43 }
 0x4b4   : > { %v1226_v44 = vpop.eup %1225 }
 0x4b5   : > { %v885_v45 = vmul.f32 2.0, %v1226_v44 }
 0x4b7   : > { %892 = vrot.lane.b32.xlu0 %v885_v45, %s1255_s25 }
 0x4b8   : > { %v1228_v46 = vpop.eup %1227 }
 0x4b9   : > { %v886_v47 = vmul.f32 2.0, %v1228_v46 }
 0x4bb   : > { %894 = vrot.lane.b32.xlu1 %v886_v47, %s1255_s25 }
 0x4bc   : > { %v1230_v56 = vpop.eup %1229 }
 0x4bd   : > { %v887_v48 = vmul.f32 2.0, %v1230_v56 }
 0x4bf   : > { %896 = vrot.lane.b32.xlu1 %v887_v48, %s1255_s25 }
 0x529   : > { %v893_v49 = vpop.permute.xlu0 %892 }
 0x52a   : > { %1154 = vmatmul.mubr.msk.f32.vlgmr.msra.gmra.mxu0 %vm898_vm2, %v893_v49 }
 0x52d   : > { %v895_v50 = vpop.permute.xlu1 %894 }
 0x52e   : > { %1157 = vmatmul.mubr.msk.f32.vlgmr.msra.gmra.mxu1 %vm898_vm2, %v895_v50 }
 0x52f   : > { %1159 = vmatprep.mubr.msk.f32.mxu1 %vm1254_vm1, %v1253_v15 }
 0x531   : > { %v897_v51 = vpop.permute.xlu1 %896 }
 0x532   : > { %1160 = vmatmul.mubr.msk.f32.gmra.mxu1 %vm898_vm2, %v897_v51 }
 0x5ea   : > { %v971_v52 = vpop.f32.mrf.mxu0 }
 0x5eb   : > { %985 = vst [vmem:[%s307_s29] sm:$0xff] %v971_v52 }
 0x5ec   : > { %v1155_v53 = vpop.f32.mrf.mxu0 }
 0x5ee   : > { %v976_v54 = vpop.f32.mrf.mxu1 }
 0x5ef   : > { %986 = vst [vmem:[%s307_s29 + $0x8] sm:$0xff] %v976_v54 }
 0x5f0   : > { %v1158_v55 = vpop.f32.mrf.mxu1 }
 0x5f2   : > { %v981_v59 = vpop.f32.mrf.mxu1 }
 0x5f3   : > { %987 = vst [vmem:[%s307_s29 + $0x10] sm:$0xff] %v981_v59 }
 0x5f4   : > { %v1161_v60 = vpop.f32.mrf.mxu1 }
 0x5f5 PF: > { %s18_s27 = sadd.s32 1, %s1237_s27  }
 0x5f6   : > { %p15_p4 = scmp.ge.s32.totalorder %s18_s27, 4  }
 0x5f8   :  { %17 = sbr.rel (!%p15_p4) target bundleno = 1 (0x1), region = 82 }

</bundles_post_ra>
